<compile_context>
chip_gen: v7x
topology: tpu7x:2x2x1
jax: 0.10.0
libtpu: 0.0.40
codegen_flags: <defaults>
</compile_context>

<pallas_src>
import jax
import jax.numpy as jnp
from jax.experimental import pallas as pl
from jax.experimental.pallas import tpu as pltpu


def _round_up(x, m):
    return (x + m - 1) // m * m


def _cdiv(a, b):
    return (a + b - 1) // b


def _vmem_capacity_bytes():
    try:
        return int(pltpu.get_tpu_info().vmem_capacity_bytes)
    except Exception:
        return 64 * 1024 * 1024  # conservative: v7x per-TensorCore VMEM


def _normalize_table(emb_table, params, *, eps, use_common_embedding):
    """One-shot pre-kernel: fold common-embedding add + LayerNorm(+gamma/beta) into the table."""
    num_entry, H = emb_table.shape

    def kernel(table_ref, params_ref, out_ref):
        x = table_ref[...].astype(jnp.float32)            # (num_entry, H)
        p = params_ref[...].astype(jnp.float32)           # (3, H) = [common, gamma, beta]
        if use_common_embedding:
            x = x + p[0:1, :]
        mean = jnp.mean(x, axis=-1, keepdims=True)
        var = jnp.mean(jnp.square(x - mean), axis=-1, keepdims=True)
        y = (x - mean) * jax.lax.rsqrt(var + eps)
        out_ref[...] = (y * p[1:2, :] + p[2:3, :]).astype(out_ref.dtype)

    # Whole (tiny) table in one VMEM block — full-array blocks need no (8,128) alignment.
    return pl.pallas_call(
        kernel,
        out_shape=jax.ShapeDtypeStruct((num_entry, H), jnp.float32),
    )(emb_table, params)


def entity_embeddings_forward(input_ids, emb_table, common_emb, gamma, beta, *,
                              eps=1e-12, use_common_embedding=True,
                              tile_n=512, out_dtype=None):
    """Pallas TPU implementation of EntityEmbeddings.forward (eval mode).

    input_ids:   (B, S) int32 indices into emb_table
    emb_table:   (num_entry, H) float32
    common_emb:  (1, H) float32  (used iff use_common_embedding)
    gamma, beta: (H,) float32 LayerNorm affine params
    out_dtype:   optional output dtype (e.g. jnp.bfloat16 to halve writeback bytes);
                 defaults to emb_table.dtype to match the PyTorch module.
    returns:     (B, S, H)
    """
    B, S = input_ids.shape
    N = B * S
    num_entry, H = emb_table.shape
    out_dtype = emb_table.dtype if out_dtype is None else out_dtype

    ids2d = input_ids.reshape(N, 1).astype(jnp.int32)

    # Loop-invariant params packed into one (3, H) array: [common, gamma, beta].
    params = jnp.concatenate(
        [common_emb.reshape(1, H).astype(jnp.float32),
         gamma.reshape(1, H).astype(jnp.float32),
         beta.reshape(1, H).astype(jnp.float32)], axis=0)

    # Fold common-add + LayerNorm into the table once; main kernel is a pure gather.
    # NOTE: out-of-range / negative ids yield all-zero output rows (PyTorch would raise).
    norm_table = _normalize_table(emb_table, params, eps=eps,
                                  use_common_embedding=use_common_embedding)

    # ---- token tiling -----------------------------------------------------------------
    tile_n = max(8, min(_round_up(tile_n, 8), _round_up(N, 8)))
    if _cdiv(N, tile_n) == 1 and N > 8:
        # Keep >=2 tiles so the "parallel" axis can occupy both v7x TensorCores.
        tile_n = _round_up(_cdiv(N, 2), 8)
    n_tiles = _cdiv(N, tile_n)

    # Sub-block for the in-kernel one-hot gather (bounds vreg live ranges / VMEM spill).
    if tile_n % 256 == 0:
        sub_n = 256
    elif tile_n % 128 == 0:
        sub_n = 128
    else:
        sub_n = tile_n
    num_sub = tile_n // sub_n

    def kernel(ids_ref, table_ref, out_ref):
        table = table_ref[...].astype(jnp.float32)                     # (num_entry, H), resident
        iota = jax.lax.broadcasted_iota(jnp.int32, (sub_n, num_entry), 1)  # hoisted (no re-bcast)

        def body(c, carry):
            off = pl.multiple_of(c * sub_n, sub_n)
            ids_c = ids_ref[pl.ds(off, sub_n), :]                      # (sub_n, 1) int32
            onehot = (ids_c == iota).astype(jnp.float32)               # (sub_n, num_entry)
            # Gather as a one-hot matmul on the otherwise-idle MXU.
            y = jnp.dot(onehot, table, preferred_element_type=jnp.float32)
            out_ref[pl.ds(off, sub_n), :] = y.astype(out_ref.dtype)
            return carry

        jax.lax.fori_loop(0, num_sub, body, 0, unroll=True)

    # ---- VMEM budget --------------------------------------------------------------------
    out_itemsize = jnp.dtype(out_dtype).itemsize
    table_bytes = num_entry * H * 4
    est = (2 * table_bytes                       # normalized table pipeline buffers
           + 2 * tile_n * 128 * 4                # ids blocks are lane-padded to 128 in VMEM
           + 2 * tile_n * H * out_itemsize       # double-buffered output tile
           + sub_n * num_entry * 4 + sub_n * H * 4)   # one-hot + matmul intermediates
    vmem_cap = _vmem_capacity_bytes()
    vmem_limit = int(min(int(0.75 * vmem_cap),   # leave headroom (v7x: 64 MiB per TC)
                         max(16 * 1024 * 1024, 2 * est + (1 << 20))))
    # NOTE: the constant-index table spec ideally gets pipeline_mode=pl.Buffered(1) (single
    # buffer); negligible at this table size, so default buffering is kept here.

    out = pl.pallas_call(
        kernel,
        out_shape=jax.ShapeDtypeStruct((N, H), out_dtype),
        grid_spec=pltpu.PrefetchScalarGridSpec(
            num_scalar_prefetch=0,
            grid=(n_tiles,),
            in_specs=[
                pl.BlockSpec((tile_n, 1), lambda i: (i, 0)),        # token ids for this tile
                pl.BlockSpec((num_entry, H), lambda i: (0, 0)),     # normalized table (invariant)
            ],
            out_specs=pl.BlockSpec((tile_n, H), lambda i: (i, 0)),  # lane-dense (H=128) stores
        ),
        compiler_params=pltpu.CompilerParams(
            dimension_semantics=("parallel",),
            vmem_limit_bytes=vmem_limit,
        ),
    )(ids2d, norm_table)

    return out.reshape(B, S, H)


def reference_forward(input_ids, emb_table, common_emb, gamma, beta,
                      *, eps=1e-12, use_common_embedding=True):
    x = emb_table[input_ids]                      # (B, S, H)
    if use_common_embedding:
        x = x + common_emb.reshape(1, 1, -1)
    mean = jnp.mean(x, axis=-1, keepdims=True)
    var = jnp.mean(jnp.square(x - mean), axis=-1, keepdims=True)
    y = (x - mean) * jax.lax.rsqrt(var + eps)
    return y * gamma + beta


if __name__ == "__main__":
    # Small synthetic config consistent with the module:
    #   config.hidden_size = 128 (lane-aligned), num_entry = 64,
    #   config.use_entity_common_embedding = True, is_pos_embedding = False,
    #   config.layer_norm_eps = 1e-12
    num_entry = 64
    hidden = 128
    batch, seq = 2, 8
    eps = 1e-12

    key = jax.random.PRNGKey(0)
    k_ids, k_emb, k_common, k_g, k_b = jax.random.split(key, 5)

    input_ids = jax.random.randint(k_ids, (batch, seq), 0, num_entry, dtype=jnp.int32)
    emb_table = (0.02 * jax.random.normal(k_emb, (num_entry, hidden))).astype(jnp.float32)
    common_emb = (0.02 * jax.random.normal(k_common, (1, hidden))).astype(jnp.float32)
    gamma = (1.0 + 0.1 * jax.random.normal(k_g, (hidden,))).astype(jnp.float32)
    beta = (0.1 * jax.random.normal(k_b, (hidden,))).astype(jnp.float32)

    out = entity_embeddings_forward(input_ids, emb_table, common_emb, gamma, beta,
                                    eps=eps, use_common_embedding=True)
    out = jax.block_until_ready(out)

    ref = reference_forward(input_ids, emb_table, common_emb, gamma, beta,
                            eps=eps, use_common_embedding=True)
    assert out.shape == (batch, seq, hidden)
    assert jnp.allclose(out, ref, atol=1e-5, rtol=1e-5), "mismatch vs reference"

    print("KERNEL_OK")
</pallas_src>

<mosaic_0001>
module attributes {stable_mosaic.version = 11 : i64} {
  func.func @kernel(%arg0: memref<64x128xf32, #tpu.memory_space<vmem>>, %arg1: memref<3x128xf32, #tpu.memory_space<vmem>>, %arg2: memref<64x128xf32, #tpu.memory_space<vmem>>) attributes {dimension_semantics = [], scalar_prefetch = 0 : i64, scratch_operands = 0 : i64, tpu.core_type = #tpu.core_type<tc>} {
    %c0 = arith.constant 0 : index
    %c0_0 = arith.constant 0 : index
    %0 = vector.load %arg0[%c0, %c0_0] : memref<64x128xf32, #tpu.memory_space<vmem>>, vector<64x128xf32>
    %c0_1 = arith.constant 0 : index
    %c0_2 = arith.constant 0 : index
    %1 = vector.load %arg1[%c0_1, %c0_2] : memref<3x128xf32, #tpu.memory_space<vmem>>, vector<3x128xf32>
    %2 = vector.extract_strided_slice %1 {offsets = [0, 0], sizes = [1, 128], strides = [1, 1]} : vector<3x128xf32> to vector<1x128xf32>
    %3 = vector.broadcast %2 : vector<1x128xf32> to vector<64x128xf32>
    %4 = arith.addf %0, %3 : vector<64x128xf32>
    %cst = arith.constant dense<0.000000e+00> : vector<64xf32>
    %5 = vector.multi_reduction <add>, %4, %cst [1] : vector<64x128xf32> to vector<64xf32>
    %6 = vector.shape_cast %5 : vector<64xf32> to vector<64x1xf32>
    %cst_3 = arith.constant 1.280000e+02 : f32
    %7 = vector.broadcast %cst_3 : f32 to vector<64x1xf32>
    %8 = arith.divf %6, %7 : vector<64x1xf32>
    %9 = vector.broadcast %8 : vector<64x1xf32> to vector<64x128xf32>
    %10 = arith.subf %4, %9 : vector<64x128xf32>
    %11 = arith.mulf %10, %10 : vector<64x128xf32>
    %cst_4 = arith.constant dense<0.000000e+00> : vector<64xf32>
    %12 = vector.multi_reduction <add>, %11, %cst_4 [1] : vector<64x128xf32> to vector<64xf32>
    %13 = vector.shape_cast %12 : vector<64xf32> to vector<64x1xf32>
    %cst_5 = arith.constant 1.280000e+02 : f32
    %14 = vector.broadcast %cst_5 : f32 to vector<64x1xf32>
    %15 = arith.divf %13, %14 : vector<64x1xf32>
    %16 = vector.broadcast %8 : vector<64x1xf32> to vector<64x128xf32>
    %17 = arith.subf %4, %16 : vector<64x128xf32>
    %cst_6 = arith.constant 9.99999996E-13 : f32
    %18 = vector.broadcast %cst_6 : f32 to vector<64x1xf32>
    %19 = arith.addf %15, %18 : vector<64x1xf32>
    %20 = math.rsqrt %19 : vector<64x1xf32>
    %21 = vector.broadcast %20 : vector<64x1xf32> to vector<64x128xf32>
    %22 = arith.mulf %17, %21 : vector<64x128xf32>
    %23 = vector.extract_strided_slice %1 {offsets = [1, 0], sizes = [1, 128], strides = [1, 1]} : vector<3x128xf32> to vector<1x128xf32>
    %24 = vector.broadcast %23 : vector<1x128xf32> to vector<64x128xf32>
    %25 = arith.mulf %22, %24 : vector<64x128xf32>
    %26 = vector.extract_strided_slice %1 {offsets = [2, 0], sizes = [1, 128], strides = [1, 1]} : vector<3x128xf32> to vector<1x128xf32>
    %27 = vector.broadcast %26 : vector<1x128xf32> to vector<64x128xf32>
    %28 = arith.addf %25, %27 : vector<64x128xf32>
    %c0_7 = arith.constant 0 : index
    %c0_8 = arith.constant 0 : index
    %29 = vector.load %arg2[%c0_7, %c0_8] : memref<64x128xf32, #tpu.memory_space<vmem>>, vector<64x128xf32>
    tpu.vector_store %arg2[%c0_7, %c0_8], %28 {strides = array<i32>} : memref<64x128xf32, #tpu.memory_space<vmem>>, vector<64x128xf32>,
    return
  }
}

</mosaic_0001>

<bundles_post_ra>
// kernel: tpu_custom_call.1
= control target key start
LH: loop header
LB: loop body
LE: loop exit
PB: predicated region body
PF: predicated region fallthrough
CT: control target
= control target key end

     0   :  { %7 = vsyncpa [#allocation3], 0  ;;  %s413_s0 = inlined_call_operand.hbm [shape: f32[64,128], index: 0, kind: input, shape index: {}]   ;;  %s414_s1 = inlined_call_operand.hbm [shape: f32[3,128], index: 1, kind: input, shape index: {}]   ;;  %s415_s2 = inlined_call_operand.hbm [shape: f32[64,128], index: 2, kind: output, shape index: {}]  }
   0x1   :  { %8 = vsyncpa [#allocation6], 0 }
   0x2   :  { %9 = vsyncpa [#allocation4], 0  ;;  %s291_s9 = smov [#allocation2]   ;;  %s219_s13 = scalar_lea.hbm %s413_s0, 1024 }
   0x3   :  { %s15_s10 = sshll.u32 %s291_s9, 4  ;;  %p220_p0 = scmp.ne.s32.totalorder %s413_s0, %s219_s13  ;;  %s16_s10 = int_to_ptr.vmem [resolvable:$true] %s15_s10 }
   0x4   :  { %p223_p1 = scmp.lt.u32.totalorder %s219_s13, %s413_s0 }
   0x6   :  { %p225_p2 = pnand %p223_p1, %p220_p0 }
   0x8   :  { %228 = shalt.err (!%p225_p2)
}
   0x9   :  { %s229_s18 = scalar_lea.vmem %s16_s10, 1024  ;;  %p234_p4 = scmp.lt.s32.totalorder %s16_s10, %s16_s10 }
   0xa   :  { %p230_p3 = scmp.ne.s32.totalorder %s16_s10, %s229_s18  ;;  %p235_p5 = scmp.lt.s32.totalorder %s229_s18, %s229_s18 }
   0xc   :  { %p236_p6 = por %p235_p5, %p234_p4 }
   0xe   :  { %p237_p7 = pnand %p236_p6, %p230_p3 }
  0x10   :  { %240 = shalt.err (!%p237_p7)
}
  0x11   :  { %s292_s19 = smov 128   ;;  %s293_s20 = smov 8  }
  0x12   :  { %21 = dma.hbm_to_vmem [thread:$0]  %s413_s0, 1024, %s16_s10, [#allocation3], %s292_s19, %s292_s19, %s293_s20  }
  0x13   :  { %s294_s23 = smov [#allocation5]   ;;  %s241_s27 = scalar_lea.hbm %s414_s1, 64 }
  0x14   :  { %s28_s24 = sshll.u32 %s294_s23, 4  ;;  %p242_p8 = scmp.ne.s32.totalorder %s414_s1, %s241_s27  ;;  %s29_s24 = int_to_ptr.vmem [resolvable:$true] %s28_s24 }
  0x15   :  { %p245_p9 = scmp.lt.u32.totalorder %s241_s27, %s414_s1 }
  0x17   :  { %p247_p10 = pnand %p245_p9, %p242_p8 }
  0x19   :  { %250 = shalt.err (!%p247_p10)
}
  0x1a   :  { %s251_s4 = scalar_lea.vmem %s29_s24, 64  ;;  %p256_p12 = scmp.lt.s32.totalorder %s29_s24, %s29_s24 }
  0x1b   :  { %p252_p11 = scmp.ne.s32.totalorder %s29_s24, %s251_s4  ;;  %p257_p13 = scmp.lt.s32.totalorder %s251_s4, %s251_s4 }
  0x1d   :  { %p258_p0 = por %p257_p13, %p256_p12 }
  0x1f   :  { %p259_p1 = pnand %p258_p0, %p252_p11 }
  0x21   :  { %262 = shalt.err (!%p259_p1)
}
  0x22   :  { %31 = dma.hbm_to_vmem [thread:$0]  %s414_s1, 64, %s29_s24, [#allocation6]  }
  0x23   :  { %285 = dma.done.wait [#allocation3], 1024  }
  0x24   :  { %286 = vsyncadd [#allocation3], 4294966272 }
  0x25   :  { %287 = dma.done.wait [#allocation6], 64  }
  0x26   :  { %288 = vsyncadd [#allocation6], 4294967232  ;;  %v47_v0 = vlaneseq  ;;  %v38_v5 = vld [vmem:[#allocation2] sm:$0xff]  ;;  %v40_v7 = vld [vmem:[#allocation2 + $0x10] sm:$0xff]  ;;  %s295_s1 = smov [#allocation7]  }
  0x27   :  { %v46_v6 = vld [vmem:[#allocation5] sm:$0x7]  ;;  %v39_v11 = vld [vmem:[#allocation2 + $0x8] sm:$0xff]  ;;  %v41_v12 = vld [vmem:[#allocation2 + $0x18] sm:$0xff]  ;;  %s185_s6 = sshll.u32 %s295_s1, 4  ;;  %s186_s6 = int_to_ptr.vmem [resolvable:$true] %s185_s6 }
  0x28   :  { %v48_v1 = vshrl.u32 %v47_v0, 7  ;;  %v42_v17 = vld [vmem:[#allocation2 + $0x20] sm:$0xff]  ;;  %v43_v18 = vld [vmem:[#allocation2 + $0x28] sm:$0xff]  ;;  %v44_v21 = vld [vmem:[#allocation2 + $0x30] sm:$0xff]  ;;  %s263_s7 = scalar_lea.vmem %s186_s6, 1024  ;;  %p268_p3 = scmp.lt.s32.totalorder %s186_s6, %s186_s6 }
  0x29   :  { %v45_v22 = vld [vmem:[#allocation2 + $0x38] sm:$0xff]  ;;  %p264_p2 = scmp.ne.s32.totalorder %s186_s6, %s263_s7  ;;  %p269_p4 = scmp.lt.s32.totalorder %s263_s7, %s263_s7 }
  0x2a   :  { %v49_v2 = vsub.s32 0, %v48_v1  ;;  %v150_v3 = vsub.s32 1, %v48_v1  ;;  %v162_v4 = vsub.s32 2, %v48_v1 }
  0x2b   :  { %p270_p5 = por %p269_p4, %p268_p3 }
  0x2c   :  { %v50_v8 = vrot.slane %v46_v6, %v49_v2  ;;  %v338_v9 = vrot.slane %v46_v6, %v150_v3  ;;  %v340_v10 = vrot.slane %v46_v6, %v162_v4 }
  0x2d   :  { %p271_p6 = pnand %p270_p5, %p264_p2 }
  0x2e   :  { %v51_v13 = vadd.f32 %v50_v8, %v38_v5  ;;  %v53_v14 = vadd.f32 %v50_v8, %v40_v7  ;;  %v52_v15 = vadd.f32 %v50_v8, %v39_v11  ;;  %v54_v16 = vadd.f32 %v50_v8, %v41_v12 }
  0x2f   :  { %v55_v19 = vadd.f32 %v50_v8, %v42_v17  ;;  %v56_v20 = vadd.f32 %v50_v8, %v43_v18  ;;  %v57_v23 = vadd.f32 %v50_v8, %v44_v21  ;;  %v58_v24 = vadd.f32 %v50_v8, %v45_v22 }
  0x30   :  { %59 = vadd.xlane.f32.xlu0 %v51_v13  ;;  %63 = vadd.xlane.f32.xlu1 %v53_v14 }
  0x34   :  { %61 = vadd.xlane.f32.xlu0 %v52_v15  ;;  %65 = vadd.xlane.f32.xlu1 %v54_v16 }
  0x38   :  { %67 = vadd.xlane.f32.xlu0 %v55_v19  ;;  %69 = vadd.xlane.f32.xlu1 %v56_v20 }
  0x3c   :  { %71 = vadd.xlane.f32.xlu0 %v57_v23  ;;  %73 = vadd.xlane.f32.xlu1 %v58_v24 }
  0xbd   :  { %v60_v25 = vpop.xlane.xlu0 %59  ;;  %v64_v26 = vpop.xlane.xlu1 %63 }
  0xbe   :  { %v76_v27 = vmul.f32 0.0078125, %v60_v25  ;;  %v78_v28 = vmul.f32 0.0078125, %v64_v26 }
  0xc0   :  { %v342_v29 = vsub.f32 %v51_v13, %v76_v27  ;;  %v344_v30 = vsub.f32 %v53_v14, %v78_v28 }
  0xc1   :  { %v62_v31 = vpop.xlane.xlu0 %61  ;;  %v66_v32 = vpop.xlane.xlu1 %65 }
  0xc2   :  { %v77_v33 = vmul.f32 0.0078125, %v62_v31  ;;  %v92_v34 = vmul.f32 %v342_v29, %v342_v29  ;;  %v79_v35 = vmul.f32 0.0078125, %v66_v32  ;;  %v94_v38 = vmul.f32 %v344_v30, %v344_v30 }
  0xc4   :  { %v348_v36 = vsub.f32 %v52_v15, %v77_v33  ;;  %100 = vadd.xlane.f32.xlu0 %v92_v34  ;;  %v350_v37 = vsub.f32 %v54_v16, %v79_v35 }
  0xc5   :  { %v68_v39 = vpop.xlane.xlu0 %67  ;;  %v70_v40 = vpop.xlane.xlu1 %69 }
  0xc6   :  { %v80_v41 = vmul.f32 0.0078125, %v68_v39  ;;  %v93_v42 = vmul.f32 %v348_v36, %v348_v36  ;;  %v81_v43 = vmul.f32 0.0078125, %v70_v40  ;;  %v95_v46 = vmul.f32 %v350_v37, %v350_v37 }
  0xc8   :  { %v356_v44 = vsub.f32 %v55_v19, %v80_v41  ;;  %104 = vadd.xlane.f32.xlu0 %v94_v38  ;;  %102 = vadd.xlane.f32.xlu1 %v93_v42  ;;  %v358_v45 = vsub.f32 %v56_v20, %v81_v43 }
  0xc9   :  { %v72_v47 = vpop.xlane.xlu0 %71  ;;  %v74_v48 = vpop.xlane.xlu1 %73 }
  0xca   :  { %v82_v49 = vmul.f32 0.0078125, %v72_v47  ;;  %v96_v50 = vmul.f32 %v356_v44, %v356_v44  ;;  %v83_v51 = vmul.f32 0.0078125, %v74_v48  ;;  %v97_v54 = vmul.f32 %v358_v45, %v358_v45 }
  0xcc   :  { %v364_v52 = vsub.f32 %v57_v23, %v82_v49  ;;  %106 = vadd.xlane.f32.xlu1 %v95_v46  ;;  %108 = vadd.xlane.f32.xlu0 %v96_v50  ;;  %v366_v53 = vsub.f32 %v58_v24, %v83_v51 }
  0xce   :  { %v98_v55 = vmul.f32 %v364_v52, %v364_v52  ;;  %v99_v56 = vmul.f32 %v366_v53, %v366_v53 }
  0xd0   :  { %110 = vadd.xlane.f32.xlu1 %v97_v54  ;;  %112 = vadd.xlane.f32.xlu0 %v98_v55 }
  0xd4   :  { %114 = vadd.xlane.f32.xlu1 %v99_v56 }
 0x151   :  { %v101_v57 = vpop.xlane.xlu0 %100 }
 0x152   :  { %v116_v58 = vmul.f32 0.0078125, %v101_v57 }
 0x154   :  { %v124_v59 = vadd.f32 1e-12, %v116_v58 }
 0x155   :  { %v103_v60 = vpop.xlane.xlu1 %102  ;;  %v105_v61 = vpop.xlane.xlu0 %104 }
 0x156   :  { %203 = vrsqrt.f32 %v124_v59  ;;  %v117_v62 = vmul.f32 0.0078125, %v103_v60  ;;  %v118_v63 = vmul.f32 0.0078125, %v105_v61 }
 0x158   :  { %v125_v0 = vadd.f32 1e-12, %v117_v62  ;;  %v126_v1 = vadd.f32 1e-12, %v118_v63 }
 0x159   :  { %v107_v2 = vpop.xlane.xlu1 %106  ;;  %v109_v3 = vpop.xlane.xlu0 %108 }
 0x15a   :  { %205 = vrsqrt.f32 %v125_v0  ;;  %v119_v4 = vmul.f32 0.0078125, %v107_v2  ;;  %v120_v5 = vmul.f32 0.0078125, %v109_v3 }
 0x15b   :  { %207 = vrsqrt.f32 %v126_v1 }
 0x15c   :  { %v127_v6 = vadd.f32 1e-12, %v119_v4  ;;  %v128_v7 = vadd.f32 1e-12, %v120_v5 }
 0x15d   :  { %v111_v8 = vpop.xlane.xlu1 %110  ;;  %v113_v11 = vpop.xlane.xlu0 %112 }
 0x15e   :  { %209 = vrsqrt.f32 %v127_v6  ;;  %v121_v12 = vmul.f32 0.0078125, %v111_v8  ;;  %v122_v13 = vmul.f32 0.0078125, %v113_v11 }
 0x15f   :  { %211 = vrsqrt.f32 %v128_v7 }
 0x160   :  { %v204_v14 = vpop.eup %203  ;;  %v129_v15 = vadd.f32 1e-12, %v121_v12  ;;  %v130_v16 = vadd.f32 1e-12, %v122_v13 }
 0x161   :  { %v140_v17 = vmul.f32 %v204_v14, %v342_v29  ;;  %v115_v18 = vpop.xlane.xlu1 %114 }
 0x162   :  { %213 = vrsqrt.f32 %v129_v15  ;;  %v123_v19 = vmul.f32 0.0078125, %v115_v18 }
 0x163   :  { %v152_v20 = vmul.f32 %v338_v9, %v140_v17  ;;  %215 = vrsqrt.f32 %v130_v16 }
 0x164   :  { %v206_v21 = vpop.eup %205  ;;  %v131_v22 = vadd.f32 1e-12, %v123_v19 }
 0x165   :  { %v208_v23 = vpop.eup %207  ;;  %v164_v24 = vadd.f32 %v340_v10, %v152_v20  ;;  %v141_v25 = vmul.f32 %v206_v21, %v348_v36 }
 0x166   :  { %v142_v26 = vmul.f32 %v208_v23, %v344_v30  ;;  %217 = vrsqrt.f32 %v131_v22 }
 0x167   :  { %172 = vst [vmem:[#allocation7] sm:$0xff] %v164_v24  ;;  %v153_v27 = vmul.f32 %v338_v9, %v141_v25 }
 0x168   :  { %v210_v28 = vpop.eup %209  ;;  %v154_v29 = vmul.f32 %v338_v9, %v142_v26 }
 0x169   :  { %v212_v31 = vpop.eup %211  ;;  %v165_v32 = vadd.f32 %v340_v10, %v153_v27  ;;  %v143_v33 = vmul.f32 %v210_v28, %v350_v37 }
 0x16a   :  { %v166_v34 = vadd.f32 %v340_v10, %v154_v29  ;;  %v144_v35 = vmul.f32 %v212_v31, %v356_v44 }
 0x16b   :  { %173 = vst [vmem:[#allocation7 + $0x8] sm:$0xff] %v165_v32  ;;  %v155_v36 = vmul.f32 %v338_v9, %v143_v33 }
 0x16c   :  { %v214_v30 = vpop.eup %213  ;;  %174 = vst [vmem:[#allocation7 + $0x10] sm:$0xff] %v166_v34  ;;  %v156_v38 = vmul.f32 %v338_v9, %v144_v35 }
 0x16d   :  { %v216_v39 = vpop.eup %215  ;;  %v167_v40 = vadd.f32 %v340_v10, %v155_v36  ;;  %v145_v41 = vmul.f32 %v214_v30, %v358_v45 }
 0x16e   :  { %v168_v42 = vadd.f32 %v340_v10, %v156_v38  ;;  %v146_v37 = vmul.f32 %v216_v39, %v364_v52 }
 0x16f   :  { %175 = vst [vmem:[#allocation7 + $0x18] sm:$0xff] %v167_v40  ;;  %v157_v43 = vmul.f32 %v338_v9, %v145_v41 }
 0x170   :  { %v218_v44 = vpop.eup %217  ;;  %176 = vst [vmem:[#allocation7 + $0x20] sm:$0xff] %v168_v42  ;;  %v158_v46 = vmul.f32 %v338_v9, %v146_v37 }
 0x171   :  { %v169_v47 = vadd.f32 %v340_v10, %v157_v43  ;;  %v147_v48 = vmul.f32 %v218_v44, %v366_v53 }
 0x172   :  { %v170_v49 = vadd.f32 %v340_v10, %v158_v46 }
 0x173   :  { %177 = vst [vmem:[#allocation7 + $0x28] sm:$0xff] %v169_v47  ;;  %v159_v45 = vmul.f32 %v338_v9, %v147_v48 }
 0x174   :  { %178 = vst [vmem:[#allocation7 + $0x30] sm:$0xff] %v170_v49 }
 0x175   :  { %v171_v50 = vadd.f32 %v340_v10, %v159_v45 }
 0x177   :  { %179 = vst [vmem:[#allocation7 + $0x38] sm:$0xff] %v171_v50 }
 0x178   :  { %274 = shalt.err (!%p271_p6)
}
 0x179   :  { %s275_s10 = scalar_lea.hbm %s415_s2, 1024 }
 0x17a   :  { %p276_p7 = scmp.ne.s32.totalorder %s415_s2, %s275_s10  ;;  %p279_p8 = scmp.lt.u32.totalorder %s275_s10, %s415_s2 }
 0x17c   :  { %p281_p9 = pnand %p279_p8, %p276_p7 }
 0x17e   :  { %284 = shalt.err (!%p281_p9)
}
 0x17f   :  { %191 = dma.vmem_to_hbm [thread:$0]  %s186_s6, 1024, %s415_s2, [#allocation4], %s292_s19, %s292_s19, %s293_s20  }
 0x180   :  { %289 = dma.done.wait [#allocation4], 1024  }
 0x181   :  { %290 = vsyncadd [#allocation4], 4294966272 }
 0x182   :  { %195 = vsyncpa [#allocation3], 1 }
 0x183   :  { %196 = vsyncpa [#allocation6], 1 }
 0x184   :  { %197 = vsyncpa [#allocation4], 1 }

</bundles_post_ra>
